<compile_context>
chip_gen: v7x
topology: tpu7x:2x2x1
jax: 0.10.0
libtpu: 0.0.40
codegen_flags: <defaults>
</compile_context>

<pallas_src>
import jax
import jax.numpy as jnp
from jax.experimental import pallas as pl
from jax.experimental.pallas import tpu as pltpu


def _round_up(x, m):
    return ((x + m - 1) // m) * m


def fc_variable_kernel(x_ref,
                       w1_ref, b1_ref,
                       w2_ref, b2_ref,
                       w3_ref, b3_ref,
                       w4_ref, b4_ref,
                       o_ref):
    """Fused encoder + decoder forward pass for one batch tile.

    Encoder: Linear -> LeakyReLU(0.2) -> Linear -> LeakyReLU(0.2)
    Decoder: Linear -> ReLU          -> Linear -> ReLU
    """
    x = x_ref[...]                      # bf16 activation tile
    cd = x.dtype                        # compute dtype for MXU inputs

    # --- encoder ---
    h = jnp.dot(x, w1_ref[...], preferred_element_type=jnp.float32) + b1_ref[...]
    h = jnp.where(h > 0, h, 0.2 * h).astype(cd)          # LeakyReLU(0.2)

    h = jnp.dot(h, w2_ref[...], preferred_element_type=jnp.float32) + b2_ref[...]
    h = jnp.where(h > 0, h, 0.2 * h).astype(cd)          # LeakyReLU(0.2)

    # --- decoder ---
    h = jnp.dot(h, w3_ref[...], preferred_element_type=jnp.float32) + b3_ref[...]
    h = jnp.maximum(h, 0.0).astype(cd)                   # ReLU

    h = jnp.dot(h, w4_ref[...], preferred_element_type=jnp.float32) + b4_ref[...]
    h = jnp.maximum(h, 0.0)                              # ReLU (kept in f32)

    o_ref[...] = h.astype(o_ref.dtype)


def fc_variable_forward(x, params, *, tb=256, compute_dtype=jnp.bfloat16):
    """x: (B, D_in). params: w1..w4 stored as (in, out) and b1..b4 as (1, out).

    Feature dims are zero-padded to multiples of 128 (exact), batch is padded
    to a multiple of the batch tile and sliced back after the call.
    """
    B, D_in = x.shape
    out_dtype = x.dtype

    w1, b1 = params["w1"], params["b1"]
    w2, b2 = params["w2"], params["b2"]
    w3, b3 = params["w3"], params["b3"]
    w4, b4 = params["w4"], params["b4"]

    D_mid = w1.shape[1]
    D_bot = w2.shape[1]

    D_in_p = _round_up(D_in, 128)
    D_mid_p = _round_up(D_mid, 128)
    D_bot_p = _round_up(D_bot, 128)

    def pad2(a, rows, cols, dtype):
        a = jnp.pad(a, ((0, rows - a.shape[0]), (0, cols - a.shape[1])))
        return a.astype(dtype)

    w1p = pad2(w1, D_in_p, D_mid_p, compute_dtype)
    b1p = pad2(b1, 1, D_mid_p, jnp.float32)
    w2p = pad2(w2, D_mid_p, D_bot_p, compute_dtype)
    b2p = pad2(b2, 1, D_bot_p, jnp.float32)
    w3p = pad2(w3, D_bot_p, D_mid_p, compute_dtype)
    b3p = pad2(b3, 1, D_mid_p, jnp.float32)
    w4p = pad2(w4, D_mid_p, D_in_p, compute_dtype)
    b4p = pad2(b4, 1, D_in_p, jnp.float32)

    # Effective batch tile: multiple of 8 (sublane constraint), no larger than
    # the sublane-rounded batch (avoid computing on an all-padding tile).
    tb_eff = max(8, _round_up(min(tb, _round_up(B, 8)), 8))
    B_p = _round_up(B, tb_eff)

    xp = x
    if (B_p != B) or (D_in_p != D_in):
        xp = jnp.pad(x, ((0, B_p - B), (0, D_in_p - D_in)))
    xp = xp.astype(compute_dtype)

    full = lambda shape: pl.BlockSpec(shape, lambda i: (0, 0))

    out = pl.pallas_call(
        fc_variable_kernel,
        out_shape=jax.ShapeDtypeStruct((B_p, D_in_p), out_dtype),
        grid_spec=pltpu.PrefetchScalarGridSpec(
            num_scalar_prefetch=0,
            grid=(B_p // tb_eff,),
            in_specs=[
                pl.BlockSpec((tb_eff, D_in_p), lambda i: (i, 0)),   # x (batch-tiled)
                full((D_in_p, D_mid_p)), full((1, D_mid_p)),        # layer 1
                full((D_mid_p, D_bot_p)), full((1, D_bot_p)),       # layer 2
                full((D_bot_p, D_mid_p)), full((1, D_mid_p)),       # layer 3
                full((D_mid_p, D_in_p)), full((1, D_in_p)),         # layer 4
            ],
            out_specs=pl.BlockSpec((tb_eff, D_in_p), lambda i: (i, 0)),
        ),
        compiler_params=pltpu.CompilerParams(
            dimension_semantics=("parallel",),
            vmem_limit_bytes=32 * 1024 * 1024),
    )(xp, w1p, b1p, w2p, b2p, w3p, b3p, w4p, b4p)

    if (B_p != B) or (D_in_p != D_in):
        out = out[:B, :D_in]
    return out


def make_params(key, num_fc_nodes_after_conv, num_fc_nodes_bottleneck,
                dtype=jnp.float32):
    """Deterministic synthetic init matching the PyTorch module's shapes.

    PyTorch nn.Linear(in, out) has weight (out, in); we store the transpose
    (in, out) so the kernel multiplies without a transpose.
    """
    d_in = num_fc_nodes_after_conv
    d_bot = num_fc_nodes_bottleneck
    d_mid = int((d_in - d_bot) / 2)

    dims = [(d_in, d_mid), (d_mid, d_bot), (d_bot, d_mid), (d_mid, d_in)]
    params = {}
    keys = jax.random.split(key, 2 * len(dims))
    for idx, (fan_in, fan_out) in enumerate(dims):
        bound = 1.0 / jnp.sqrt(fan_in)
        w = jax.random.uniform(keys[2 * idx], (fan_in, fan_out),
                               minval=-bound, maxval=bound, dtype=dtype)
        b = jax.random.uniform(keys[2 * idx + 1], (1, fan_out),
                               minval=-bound, maxval=bound, dtype=dtype)
        params[f"w{idx + 1}"] = w
        params[f"b{idx + 1}"] = b
    return params, d_mid


def reference_forward(x, params):
    """Plain-JAX f32 reference of the PyTorch forward pass."""
    h = x @ params["w1"] + params["b1"]
    h = jnp.where(h > 0, h, 0.2 * h)
    h = h @ params["w2"] + params["b2"]
    h = jnp.where(h > 0, h, 0.2 * h)
    h = h @ params["w3"] + params["b3"]
    h = jnp.maximum(h, 0.0)
    h = h @ params["w4"] + params["b4"]
    h = jnp.maximum(h, 0.0)
    return h


def reference_forward_mixed(x, params, compute_dtype=jnp.bfloat16):
    """Plain-JAX reference mirroring the kernel's bf16/f32 mixed precision."""
    cd = compute_dtype
    h = x.astype(cd)
    h = jnp.dot(h, params["w1"].astype(cd),
                preferred_element_type=jnp.float32) + params["b1"]
    h = jnp.where(h > 0, h, 0.2 * h).astype(cd)
    h = jnp.dot(h, params["w2"].astype(cd),
                preferred_element_type=jnp.float32) + params["b2"]
    h = jnp.where(h > 0, h, 0.2 * h).astype(cd)
    h = jnp.dot(h, params["w3"].astype(cd),
                preferred_element_type=jnp.float32) + params["b3"]
    h = jnp.maximum(h, 0.0).astype(cd)
    h = jnp.dot(h, params["w4"].astype(cd),
                preferred_element_type=jnp.float32) + params["b4"]
    h = jnp.maximum(h, 0.0)
    return h.astype(x.dtype)


if __name__ == "__main__":
    key = jax.random.PRNGKey(0)
    k_param, k_x = jax.random.split(key)

    # Small, module-consistent sizes: after-conv features 256, bottleneck 128
    # -> intermediate = (256 - 128) // 2 = 64 (padded to 128 inside the
    # wrapper). Batch 32 -> a single grid step at this size; larger batches
    # tile at 256 rows per step.
    num_fc_nodes_after_conv = 256
    num_fc_nodes_bottleneck = 128
    batch = 32

    params, d_mid = make_params(k_param, num_fc_nodes_after_conv,
                                num_fc_nodes_bottleneck)
    x = jax.random.normal(k_x, (batch, num_fc_nodes_after_conv),
                          dtype=jnp.float32)

    out = fc_variable_forward(x, params, tb=256)
    out = jax.block_until_ready(out)

    ref_mixed = reference_forward_mixed(x, params)
    ref_f32 = reference_forward(x, params)

    assert out.shape == (batch, num_fc_nodes_after_conv)
    # Exact-recipe check (same bf16/f32 mixed precision as the kernel).
    assert jnp.allclose(out, ref_mixed, atol=2e-2, rtol=2e-2), \
        "mismatch vs mixed-precision reference"
    # Semantics check against the pure-f32 PyTorch-equivalent forward.
    assert jnp.allclose(out, ref_f32, atol=5e-2, rtol=5e-2), \
        "mismatch vs f32 reference"

    print("KERNEL_OK")
</pallas_src>

<mosaic_0001>
module attributes {stable_mosaic.version = 11 : i64} {
  func.func @fc_variable_kernel(%arg0: i32, %arg1: memref<32x256xbf16, #tpu.memory_space<vmem>>, %arg2: memref<256x128xbf16, #tpu.memory_space<vmem>>, %arg3: memref<1x128xf32, #tpu.memory_space<vmem>>, %arg4: memref<128x128xbf16, #tpu.memory_space<vmem>>, %arg5: memref<1x128xf32, #tpu.memory_space<vmem>>, %arg6: memref<128x128xbf16, #tpu.memory_space<vmem>>, %arg7: memref<1x128xf32, #tpu.memory_space<vmem>>, %arg8: memref<128x256xbf16, #tpu.memory_space<vmem>>, %arg9: memref<1x256xf32, #tpu.memory_space<vmem>>, %arg10: memref<32x256xf32, #tpu.memory_space<vmem>>) attributes {dimension_semantics = [#tpu.dimension_semantics<parallel>], iteration_bounds = array<i64: 1>, scalar_prefetch = 0 : i64, scratch_operands = 0 : i64, tpu.core_type = #tpu.core_type<tc>, window_params = [{transform_indices = @transform_0, window_bounds = array<i64: 32, 256>}, {pipeline_mode = #tpu.pipeline_mode<synchronous>, transform_indices = @transform_1, window_bounds = array<i64: 256, 128>}, {pipeline_mode = #tpu.pipeline_mode<synchronous>, transform_indices = @transform_2, window_bounds = array<i64: 1, 128>}, {pipeline_mode = #tpu.pipeline_mode<synchronous>, transform_indices = @transform_3, window_bounds = array<i64: 128, 128>}, {pipeline_mode = #tpu.pipeline_mode<synchronous>, transform_indices = @transform_4, window_bounds = array<i64: 1, 128>}, {pipeline_mode = #tpu.pipeline_mode<synchronous>, transform_indices = @transform_5, window_bounds = array<i64: 128, 128>}, {pipeline_mode = #tpu.pipeline_mode<synchronous>, transform_indices = @transform_6, window_bounds = array<i64: 1, 128>}, {pipeline_mode = #tpu.pipeline_mode<synchronous>, transform_indices = @transform_7, window_bounds = array<i64: 128, 256>}, {pipeline_mode = #tpu.pipeline_mode<synchronous>, transform_indices = @transform_8, window_bounds = array<i64: 1, 256>}, {transform_indices = @transform_9, window_bounds = array<i64: 32, 256>}]} {
    %c0 = arith.constant 0 : index
    %c0_0 = arith.constant 0 : index
    %0 = vector.load %arg1[%c0, %c0_0] : memref<32x256xbf16, #tpu.memory_space<vmem>>, vector<32x256xbf16>
    %c0_1 = arith.constant 0 : index
    %c0_2 = arith.constant 0 : index
    %1 = vector.load %arg2[%c0_1, %c0_2] : memref<256x128xbf16, #tpu.memory_space<vmem>>, vector<256x128xbf16>
    %cst = arith.constant dense<0.000000e+00> : vector<32x128xf32>
    %2 = tpu.matmul %0, %1, %cst {dimension_numbers = #tpu.dot_dimension_numbers<[1], [0], [0], [1], [0, 0, 1, 1], [], []>} : vector<32x256xbf16>, vector<256x128xbf16>, vector<32x128xf32> -> vector<32x128xf32>
    %c0_3 = arith.constant 0 : index
    %c0_4 = arith.constant 0 : index
    %3 = vector.load %arg3[%c0_3, %c0_4] : memref<1x128xf32, #tpu.memory_space<vmem>>, vector<1x128xf32>
    %4 = vector.broadcast %3 : vector<1x128xf32> to vector<32x128xf32>
    %5 = arith.addf %2, %4 : vector<32x128xf32>
    %cst_5 = arith.constant 0.000000e+00 : f32
    %6 = vector.broadcast %cst_5 : f32 to vector<32x128xf32>
    %7 = arith.cmpf ogt, %5, %6 : vector<32x128xf32>
    %cst_6 = arith.constant 2.000000e-01 : f32
    %8 = vector.broadcast %cst_6 : f32 to vector<32x128xf32>
    %9 = arith.mulf %8, %5 : vector<32x128xf32>
    %10 = arith.select %7, %5, %9 : vector<32x128xi1>, vector<32x128xf32>
    %11 = arith.truncf %10 : vector<32x128xf32> to vector<32x128xbf16>
    %c0_7 = arith.constant 0 : index
    %c0_8 = arith.constant 0 : index
    %12 = vector.load %arg4[%c0_7, %c0_8] : memref<128x128xbf16, #tpu.memory_space<vmem>>, vector<128x128xbf16>
    %cst_9 = arith.constant dense<0.000000e+00> : vector<32x128xf32>
    %13 = tpu.matmul %11, %12, %cst_9 {dimension_numbers = #tpu.dot_dimension_numbers<[1], [0], [0], [1], [0, 0, 1, 1], [], []>} : vector<32x128xbf16>, vector<128x128xbf16>, vector<32x128xf32> -> vector<32x128xf32>
    %c0_10 = arith.constant 0 : index
    %c0_11 = arith.constant 0 : index
    %14 = vector.load %arg5[%c0_10, %c0_11] : memref<1x128xf32, #tpu.memory_space<vmem>>, vector<1x128xf32>
    %15 = vector.broadcast %14 : vector<1x128xf32> to vector<32x128xf32>
    %16 = arith.addf %13, %15 : vector<32x128xf32>
    %cst_12 = arith.constant 0.000000e+00 : f32
    %17 = vector.broadcast %cst_12 : f32 to vector<32x128xf32>
    %18 = arith.cmpf ogt, %16, %17 : vector<32x128xf32>
    %cst_13 = arith.constant 2.000000e-01 : f32
    %19 = vector.broadcast %cst_13 : f32 to vector<32x128xf32>
    %20 = arith.mulf %19, %16 : vector<32x128xf32>
    %21 = arith.select %18, %16, %20 : vector<32x128xi1>, vector<32x128xf32>
    %22 = arith.truncf %21 : vector<32x128xf32> to vector<32x128xbf16>
    %c0_14 = arith.constant 0 : index
    %c0_15 = arith.constant 0 : index
    %23 = vector.load %arg6[%c0_14, %c0_15] : memref<128x128xbf16, #tpu.memory_space<vmem>>, vector<128x128xbf16>
    %cst_16 = arith.constant dense<0.000000e+00> : vector<32x128xf32>
    %24 = tpu.matmul %22, %23, %cst_16 {dimension_numbers = #tpu.dot_dimension_numbers<[1], [0], [0], [1], [0, 0, 1, 1], [], []>} : vector<32x128xbf16>, vector<128x128xbf16>, vector<32x128xf32> -> vector<32x128xf32>
    %c0_17 = arith.constant 0 : index
    %c0_18 = arith.constant 0 : index
    %25 = vector.load %arg7[%c0_17, %c0_18] : memref<1x128xf32, #tpu.memory_space<vmem>>, vector<1x128xf32>
    %26 = vector.broadcast %25 : vector<1x128xf32> to vector<32x128xf32>
    %27 = arith.addf %24, %26 : vector<32x128xf32>
    %cst_19 = arith.constant 0.000000e+00 : f32
    %28 = vector.broadcast %cst_19 : f32 to vector<32x128xf32>
    %29 = arith.maximumf %27, %28 : vector<32x128xf32>
    %30 = arith.truncf %29 : vector<32x128xf32> to vector<32x128xbf16>
    %c0_20 = arith.constant 0 : index
    %c0_21 = arith.constant 0 : index
    %31 = vector.load %arg8[%c0_20, %c0_21] : memref<128x256xbf16, #tpu.memory_space<vmem>>, vector<128x256xbf16>
    %cst_22 = arith.constant dense<0.000000e+00> : vector<32x256xf32>
    %32 = tpu.matmul %30, %31, %cst_22 {dimension_numbers = #tpu.dot_dimension_numbers<[1], [0], [0], [1], [0, 0, 1, 1], [], []>} : vector<32x128xbf16>, vector<128x256xbf16>, vector<32x256xf32> -> vector<32x256xf32>
    %c0_23 = arith.constant 0 : index
    %c0_24 = arith.constant 0 : index
    %33 = vector.load %arg9[%c0_23, %c0_24] : memref<1x256xf32, #tpu.memory_space<vmem>>, vector<1x256xf32>
    %34 = vector.broadcast %33 : vector<1x256xf32> to vector<32x256xf32>
    %35 = arith.addf %32, %34 : vector<32x256xf32>
    %cst_25 = arith.constant 0.000000e+00 : f32
    %36 = vector.broadcast %cst_25 : f32 to vector<32x256xf32>
    %37 = arith.maximumf %35, %36 : vector<32x256xf32>
    %c0_26 = arith.constant 0 : index
    %c0_27 = arith.constant 0 : index
    %38 = vector.load %arg10[%c0_26, %c0_27] : memref<32x256xf32, #tpu.memory_space<vmem>>, vector<32x256xf32>
    tpu.vector_store %arg10[%c0_26, %c0_27], %37 {strides = array<i32>} : memref<32x256xf32, #tpu.memory_space<vmem>>, vector<32x256xf32>,
    return
  }
  func.func @transform_0(%arg0: i32) -> (i32, i32) {
    %c0_i32 = arith.constant 0 : i32
    %c0_i32_0 = arith.constant 0 : i32
    return %arg0, %c0_i32 : i32, i32
  }
  func.func @transform_1(%arg0: i32) -> (i32, i32) {
    %c0_i32 = arith.constant 0 : i32
    %c0_i32_0 = arith.constant 0 : i32
    %c0_i32_1 = arith.constant 0 : i32
    return %c0_i32, %c0_i32_0 : i32, i32
  }
  func.func @transform_2(%arg0: i32) -> (i32, i32) {
    %c0_i32 = arith.constant 0 : i32
    %c0_i32_0 = arith.constant 0 : i32
    %c0_i32_1 = arith.constant 0 : i32
    return %c0_i32, %c0_i32_0 : i32, i32
  }
  func.func @transform_3(%arg0: i32) -> (i32, i32) {
    %c0_i32 = arith.constant 0 : i32
    %c0_i32_0 = arith.constant 0 : i32
    %c0_i32_1 = arith.constant 0 : i32
    return %c0_i32, %c0_i32_0 : i32, i32
  }
  func.func @transform_4(%arg0: i32) -> (i32, i32) {
    %c0_i32 = arith.constant 0 : i32
    %c0_i32_0 = arith.constant 0 : i32
    %c0_i32_1 = arith.constant 0 : i32
    return %c0_i32, %c0_i32_0 : i32, i32
  }
  func.func @transform_5(%arg0: i32) -> (i32, i32) {
    %c0_i32 = arith.constant 0 : i32
    %c0_i32_0 = arith.constant 0 : i32
    %c0_i32_1 = arith.constant 0 : i32
    return %c0_i32, %c0_i32_0 : i32, i32
  }
  func.func @transform_6(%arg0: i32) -> (i32, i32) {
    %c0_i32 = arith.constant 0 : i32
    %c0_i32_0 = arith.constant 0 : i32
    %c0_i32_1 = arith.constant 0 : i32
    return %c0_i32, %c0_i32_0 : i32, i32
  }
  func.func @transform_7(%arg0: i32) -> (i32, i32) {
    %c0_i32 = arith.constant 0 : i32
    %c0_i32_0 = arith.constant 0 : i32
    %c0_i32_1 = arith.constant 0 : i32
    return %c0_i32, %c0_i32_0 : i32, i32
  }
  func.func @transform_8(%arg0: i32) -> (i32, i32) {
    %c0_i32 = arith.constant 0 : i32
    %c0_i32_0 = arith.constant 0 : i32
    %c0_i32_1 = arith.constant 0 : i32
    return %c0_i32, %c0_i32_0 : i32, i32
  }
  func.func @transform_9(%arg0: i32) -> (i32, i32) {
    %c0_i32 = arith.constant 0 : i32
    %c0_i32_0 = arith.constant 0 : i32
    return %arg0, %c0_i32 : i32, i32
  }
}

</mosaic_0001>

<bundles_post_ra>
// kernel: tpu_custom_call.1
= control target key start
LH: loop header
LB: loop body
LE: loop exit
PB: predicated region body
PF: predicated region fallthrough
CT: control target
= control target key end

     0   :  { %14 = vsyncpa [#allocation3], 0  ;;  %s1300_s0 = inlined_call_operand.hbm [shape: bf16[32,256], index: 0, kind: input, shape index: {}]   ;;  %s1301_s1 = inlined_call_operand.hbm [shape: bf16[256,128], index: 1, kind: input, shape index: {}]   ;;  %s1302_s2 = inlined_call_operand.vmem [shape: f32[1,128], index: 2, kind: input, shape index: {}]   ;;  %s1303_s3 = inlined_call_operand.hbm [shape: bf16[128,128], index: 3, kind: input, shape index: {}]   ;;  %s1304_s4 = inlined_call_operand.vmem [shape: f32[1,128], index: 4, kind: input, shape index: {}]   ;;  %s1305_s5 = inlined_call_operand.hbm [shape: bf16[128,128], index: 5, kind: input, shape index: {}]   ;;  %s1306_s6 = inlined_call_operand.vmem [shape: f32[1,128], index: 6, kind: input, shape index: {}]   ;;  %s1307_s7 = inlined_call_operand.hbm [shape: bf16[128,256], index: 7, kind: input, shape index: {}]   ;;  %s1308_s8 = inlined_call_operand.vmem [shape: f32[1,256], index: 8, kind: input, shape index: {}]   ;;  %s1309_s9 = inlined_call_operand.hbm [shape: f32[32,256], index: 9, kind: output, shape index: {}]  }
   0x1   :  { %15 = vsyncpa [#allocation6], 0 }
   0x2   :  { %16 = vsyncpa [#allocation9], 0 }
   0x3   :  { %17 = vsyncpa [#allocation4], 0  ;;  %s1138_s30 = smov [#allocation5]   ;;  %s998_s13 = scalar_lea.hbm %s1301_s1, 2048 }
   0x4   :  { %s35_s10 = sshll.u32 %s1138_s30, 4  ;;  %p999_p0 = scmp.ne.s32.totalorder %s1301_s1, %s998_s13  ;;  %s36_s10 = int_to_ptr.vmem [resolvable:$true] %s35_s10 }
   0x5   :  { %p1002_p1 = scmp.lt.u32.totalorder %s998_s13, %s1301_s1 }
   0x7   :  { %p1004_p2 = pnand %p1002_p1, %p999_p0 }
   0x9   :  { %1007 = shalt.err (!%p1004_p2)
}
   0xa   :  { %s1008_s18 = scalar_lea.vmem %s36_s10, 2048  ;;  %p1013_p4 = scmp.lt.s32.totalorder %s36_s10, %s36_s10 }
   0xb   :  { %p1009_p3 = scmp.ne.s32.totalorder %s36_s10, %s1008_s18  ;;  %p1014_p5 = scmp.lt.s32.totalorder %s1008_s18, %s1008_s18 }
   0xd   :  { %p1015_p6 = por %p1014_p5, %p1013_p4 }
   0xf   :  { %p1016_p7 = pnand %p1015_p6, %p1009_p3 }
  0x11   :  { %1019 = shalt.err (!%p1016_p7)
}
  0x12   :  { %s1139_s19 = smov 64   ;;  %s1140_s20 = smov 4  }
  0x13   :  { %41 = dma.hbm_to_vmem [thread:$0]  %s1301_s1, 2048, %s36_s10, [#allocation6], %s1139_s19, %s1139_s19, %s1140_s20  }
  0x14   :  { %s1141_s23 = smov [#allocation8]   ;;  %s1142_s25 = smov [#allocation2]  }
  0x15   :  { %s63_s24 = sshll.u32 %s1141_s23, 4  ;;  %s23_s26 = sshll.u32 %s1142_s25, 4  ;;  %s64_s24 = int_to_ptr.vmem [resolvable:$true] %s63_s24  ;;  %s24_s26 = int_to_ptr.vmem [resolvable:$true] %s23_s26 }
  0x16   :  { %s1020_s29 = scalar_lea.hbm %s1305_s5, 1024 }
  0x17   :  { %p1021_p8 = scmp.ne.s32.totalorder %s1305_s5, %s1020_s29  ;;  %p1024_p9 = scmp.lt.u32.totalorder %s1020_s29, %s1305_s5 }
  0x19   :  { %p1026_p10 = pnand %p1024_p9, %p1021_p8 }
  0x1b   :  { %1029 = shalt.err (!%p1026_p10)
}
  0x1c   :  { %s1030_s1 = scalar_lea.vmem %s64_s24, 1024  ;;  %p1035_p12 = scmp.lt.s32.totalorder %s64_s24, %s64_s24 }
  0x1d   :  { %p1031_p11 = scmp.ne.s32.totalorder %s64_s24, %s1030_s1  ;;  %p1036_p13 = scmp.lt.s32.totalorder %s1030_s1, %s1030_s1 }
  0x1f   :  { %p1037_p0 = por %p1036_p13, %p1035_p12 }
  0x21   :  { %p1038_p1 = pnand %p1037_p0, %p1031_p11 }
  0x23   :  { %1041 = shalt.err (!%p1038_p1)
}
  0x24   :  { %69 = dma.hbm_to_vmem [thread:$0]  %s1305_s5, 1024, %s64_s24, [#allocation9], %s1139_s19, %s1139_s19, %s1140_s20  }
  0x25   :  { %s1042_s17 = scalar_lea.hbm %s1300_s0, 512 }
  0x26   :  { %p1043_p2 = scmp.ne.s32.totalorder %s1300_s0, %s1042_s17  ;;  %p1046_p3 = scmp.lt.u32.totalorder %s1042_s17, %s1300_s0 }
  0x28   :  { %p1048_p4 = pnand %p1046_p3, %p1043_p2 }
  0x2a   :  { %1051 = shalt.err (!%p1048_p4)
}
  0x2b   :  { %s1052_s25 = scalar_lea.vmem %s24_s26, 512  ;;  %p1057_p6 = scmp.lt.s32.totalorder %s24_s26, %s24_s26 }
  0x2c   :  { %p1053_p5 = scmp.ne.s32.totalorder %s24_s26, %s1052_s25  ;;  %p1058_p7 = scmp.lt.s32.totalorder %s1052_s25, %s1052_s25 }
  0x2e   :  { %p1059_p8 = por %p1058_p7, %p1057_p6 }
  0x30   :  { %p1060_p9 = pnand %p1059_p8, %p1053_p5 }
  0x32   :  { %1063 = shalt.err (!%p1060_p9)
}
  0x33   :  { %s1143_s5 = smov 128   ;;  %s1144_s24 = smov 8  }
  0x34   :  { %29 = dma.hbm_to_vmem [thread:$0]  %s1300_s0, 512, %s24_s26, [#allocation3], %s1143_s5, %s1143_s5, %s1144_s24  }
  0x35   :  { %s1145_s29 = smov [#allocation7]   ;;  %s1146_s11 = smov [#allocation10]  }
  0x36   :  { %s49_s30 = sshll.u32 %s1145_s29, 4  ;;  %s77_s12 = sshll.u32 %s1146_s11, 4  ;;  %s50_s30 = int_to_ptr.vmem [resolvable:$true] %s49_s30  ;;  %s78_s12 = int_to_ptr.vmem [resolvable:$true] %s77_s12 }
  0x37   :  { %s1064_s10 = scalar_lea.hbm %s1303_s3, 1024 }
  0x38   :  { %p1065_p10 = scmp.ne.s32.totalorder %s1303_s3, %s1064_s10  ;;  %p1068_p11 = scmp.lt.u32.totalorder %s1064_s10, %s1303_s3 }
  0x3a   :  { %p1070_p12 = pnand %p1068_p11, %p1065_p10 }
  0x3c   :  { %1073 = shalt.err (!%p1070_p12)
}
  0x3d   :  { %s1074_s0 = scalar_lea.vmem %s50_s30, 1024  ;;  %p1079_p0 = scmp.lt.s32.totalorder %s50_s30, %s50_s30 }
  0x3e   :  { %p1075_p13 = scmp.ne.s32.totalorder %s50_s30, %s1074_s0  ;;  %p1080_p1 = scmp.lt.s32.totalorder %s1074_s0, %s1074_s0 }
  0x40   :  { %p1081_p2 = por %p1080_p1, %p1079_p0 }
  0x42   :  { %p1082_p3 = pnand %p1081_p2, %p1075_p13 }
  0x44   :  { %1085 = shalt.err (!%p1082_p3)
}
  0x45   :  { %55 = dma.hbm_to_vmem [thread:$0]  %s1303_s3, 1024, %s50_s30, [#allocation6], %s1139_s19, %s1139_s19, %s1140_s20  }
  0x46   :  { %s1086_s23 = scalar_lea.hbm %s1307_s7, 2048 }
  0x47   :  { %p1087_p4 = scmp.ne.s32.totalorder %s1307_s7, %s1086_s23  ;;  %p1090_p5 = scmp.lt.u32.totalorder %s1086_s23, %s1307_s7 }
  0x49   :  { %p1092_p6 = pnand %p1090_p5, %p1087_p4 }
  0x4b   :  { %1095 = shalt.err (!%p1092_p6)
}
  0x4c   :  { %s1096_s11 = scalar_lea.vmem %s78_s12, 2048  ;;  %p1101_p8 = scmp.lt.s32.totalorder %s78_s12, %s78_s12 }
  0x4d   :  { %p1097_p7 = scmp.ne.s32.totalorder %s78_s12, %s1096_s11  ;;  %p1102_p9 = scmp.lt.s32.totalorder %s1096_s11, %s1096_s11 }
  0x4f   :  { %p1103_p10 = por %p1102_p9, %p1101_p8 }
  0x51   :  { %p1104_p11 = pnand %p1103_p10, %p1097_p7 }
  0x53   :  { %1107 = shalt.err (!%p1104_p11)
}
  0x54   :  { %83 = dma.hbm_to_vmem [thread:$0]  %s1307_s7, 2048, %s78_s12, [#allocation9], %s1143_s5, %s1143_s5, %s1144_s24  }
  0x55   :  { %1130 = dma.done.wait [#allocation3], 512  }
  0x56   :  { %1131 = vsyncadd [#allocation3], 4294966784 }
  0x57   :  { %1132 = dma.done.wait [#allocation6], 3072  }
  0x58   :  { %1133 = vsyncadd [#allocation6], 4294964224 }
  0x59   :  { %1134 = dma.done.wait [#allocation9], 3072  }
  0x5a   :  { %1135 = vsyncadd [#allocation9], 4294964224  ;;  %v936_v0 = vld [vmem:[#allocation5 + $0x40] sm:$0xff]   ;;  %v938_v2 = vld [vmem:[#allocation5 + $0x48] sm:$0xff]  }
  0x5b   :  { %v937_v1 = vld [vmem:[#allocation5] sm:$0xff]   ;;  %835 = vmatprep.subr.bf16.mxu0 %v936_v0  ;;  %v939_v3 = vld [vmem:[#allocation5 + $0x8] sm:$0xff]   ;;  %v940_v4 = vld [vmem:[#allocation5 + $0x50] sm:$0xff]  }
  0x5c   :  { %836 = vmatpush3.bf16.msra.mxu0 %v937_v1  ;;  %v941_v5 = vld [vmem:[#allocation5 + $0x10] sm:$0xff]   ;;  %v942_v6 = vld [vmem:[#allocation5 + $0x58] sm:$0xff]   ;;  %v944_v8 = vld [vmem:[#allocation5 + $0x60] sm:$0xff]  }
  0x5d   :  { %837 = vmatprep.subr.bf16.mxu0 %v938_v2  ;;  %v943_v7 = vld [vmem:[#allocation5 + $0x18] sm:$0xff]   ;;  %v945_v9 = vld [vmem:[#allocation5 + $0x20] sm:$0xff]   ;;  %v946_v10 = vld [vmem:[#allocation5 + $0x68] sm:$0xff]  }
  0x5e   :  { %v954_v11 = vld [vmem:[#allocation2 + $0x4] ss:$8 sps:$4 sm:$0xff]   ;;  %v948_v13 = vld [vmem:[#allocation5 + $0x70] sm:$0xff]   ;;  %v950_v18 = vld [vmem:[#allocation5 + $0x78] sm:$0xff]  }
  0x5f   :  { %v947_v12 = vld [vmem:[#allocation5 + $0x28] sm:$0xff]   ;;  %293 = vmatprep.mubr.bf16.mxu0 %v954_v11  ;;  %v958_v14 = vld [vmem:[#allocation7] sm:$0xff]   ;;  %v949_v16 = vld [vmem:[#allocation5 + $0x30] sm:$0xff]  }
  0x60   :  { %838 = vmatpush3.bf16.msra.mxu0 %v939_v3  ;;  %v959_v15 = vld [vmem:[#allocation7 + $0x8] sm:$0xff]   ;;  %883 = vmatprep.subr.bf16.mxu1 %v958_v14  ;;  %v960_v17 = vld [vmem:[#allocation7 + $0x10] sm:$0xff]   ;;  %v951_v19 = vld [vmem:[#allocation5 + $0x38] sm:$0xff]  }
  0x61   :  { %839 = vmatprep.subr.bf16.mxu0 %v940_v4  ;;  %884 = vmatpush3.bf16.msra.mxu1 %v958_v14  ;;  %v952_v20 = vld [vmem:[#allocation2] ss:$8 sps:$4 sm:$0xff]   ;;  %v955_v21 = vld [vmem:[#allocation2 + $0x14] ss:$8 sps:$4 sm:$0xff]   ;;  %v957_v22 = vld [vmem:[#allocation2 + $0x10] ss:$8 sps:$4 sm:$0xff]  }
  0x62   :  { %885 = vmatprep.subr.bf16.mxu1 %v959_v15  ;;  %v961_v23 = vld [vmem:[#allocation7 + $0x18] sm:$0xff]   ;;  %v962_v24 = vld [vmem:[#allocation7 + $0x20] sm:$0xff]   ;;  %v963_v25 = vld [vmem:[#allocation7 + $0x28] sm:$0xff]  }
  0x63   :  { %v964_v26 = vld [vmem:[#allocation7 + $0x30] sm:$0xff]   ;;  %v965_v27 = vld [vmem:[#allocation7 + $0x38] sm:$0xff]   ;;  %v966_v28 = vld [vmem:[#allocation8] sm:$0xff]  }
  0x64   :  { %840 = vmatpush3.bf16.msra.mxu0 %v941_v5  ;;  %v967_v29 = vld [vmem:[#allocation8 + $0x8] sm:$0xff]   ;;  %v968_v30 = vld [vmem:[#allocation8 + $0x10] sm:$0xff]   ;;  %v969_v31 = vld [vmem:[#allocation8 + $0x18] sm:$0xff]  }
  0x65   :  { %841 = vmatprep.subr.bf16.mxu0 %v942_v6  ;;  %886 = vmatpush3.bf16.msra.mxu1 %v959_v15  ;;  %v970_v32 = vld [vmem:[#allocation8 + $0x20] sm:$0xff]   ;;  %v971_v60 = vld [vmem:[#allocation8 + $0x28] sm:$0xff]   ;;  %v972_v61 = vld [vmem:[#allocation8 + $0x30] sm:$0xff]  }
  0x66   :  { %887 = vmatprep.subr.bf16.mxu1 %v960_v17  ;;  %v780_v34 = vld [vmem:[%s1302_s2] ss:$0 sm:$0xff]  ;;  %v973_v62 = vld [vmem:[#allocation8 + $0x38] sm:$0xff]   ;;  %v976_v0 = vld [vmem:[#allocation10 + $0x4] ss:$8 sps:$4 sm:$0xff]  }
  0x67   :  { %v974_v63 = vld [vmem:[#allocation10] ss:$8 sps:$4 sm:$0xff]   ;;  %v979_v1 = vld [vmem:[#allocation10 + $0x14] ss:$8 sps:$4 sm:$0xff]   ;;  %v977_v2 = vld [vmem:[#allocation10 + $0x10] ss:$8 sps:$4 sm:$0xff]  }
  0x68   :  { %842 = vmatpush3.bf16.msra.mxu0 %v943_v7  ;;  %v982_v3 = vld [vmem:[#allocation10 + $0x24] ss:$8 sps:$4 sm:$0xff]   ;;  %v980_v4 = vld [vmem:[#allocation10 + $0x20] ss:$8 sps:$4 sm:$0xff]   ;;  %v985_v5 = vld [vmem:[#allocation10 + $0x34] ss:$8 sps:$4 sm:$0xff]  }
  0x69   :  { %843 = vmatprep.subr.bf16.mxu0 %v944_v8  ;;  %888 = vmatpush3.bf16.msra.mxu1 %v960_v17  ;;  %v983_v6 = vld [vmem:[#allocation10 + $0x30] ss:$8 sps:$4 sm:$0xff]   ;;  %v988_v7 = vld [vmem:[#allocation10 + $0x44] ss:$8 sps:$4 sm:$0xff]   ;;  %v986_v8 = vld [vmem:[#allocation10 + $0x40] ss:$8 sps:$4 sm:$0xff]  }
  0x6a   :  { %889 = vmatprep.subr.bf16.mxu1 %v961_v23  ;;  %v801_v11 = vld [vmem:[%s1304_s4] ss:$0 sm:$0xff] }
  0x6c   :  { %844 = vmatpush3.bf16.msra.mxu0 %v945_v9  ;;  %v991_v9 = vld [vmem:[#allocation10 + $0x54] ss:$8 sps:$4 sm:$0xff]  }
  0x6d   :  { %845 = vmatprep.subr.bf16.mxu0 %v946_v10  ;;  %890 = vmatpush3.bf16.msra.mxu1 %v961_v23  ;;  %v989_v10 = vld [vmem:[#allocation10 + $0x50] ss:$8 sps:$4 sm:$0xff]  }
  0x6e   :  { %891 = vmatprep.subr.bf16.mxu1 %v962_v24 }
  0x70   :  { %846 = vmatpush3.bf16.msra.mxu0 %v947_v12 }
  0x71   :  { %847 = vmatprep.subr.bf16.mxu0 %v948_v13  ;;  %892 = vmatpush3.bf16.msra.mxu1 %v962_v24 }
  0x72   :  { %893 = vmatprep.subr.bf16.mxu1 %v963_v25 }
  0x74   :  { %848 = vmatpush3.bf16.msra.mxu0 %v949_v16 }
  0x75   :  { %849 = vmatprep.subr.bf16.mxu0 %v950_v18  ;;  %894 = vmatpush3.bf16.msra.mxu1 %v963_v25 }
  0x76   :  { %895 = vmatprep.subr.bf16.mxu1 %v964_v26 }
  0x78   :  { %850 = vmatpush3.bf16.msra.mxu0 %v951_v19 }
  0x79   :  { %896 = vmatpush3.bf16.msra.mxu1 %v964_v26  ;;  %903 = vmatprep.subr.bf16.mxu0 %v966_v28 }
  0x7a   :  { %897 = vmatprep.subr.bf16.mxu1 %v965_v27 }
  0x7b   :  { %294 = vmatmul.mubr.bf16.vlgmr.msra.gmra.mrb[0].mxu0 %v952_v20 }
  0x7c   :  { %301 = vmatprep.mubr.bf16.mxu0 %v955_v21  ;;  %904 = vmatpush3.bf16.msra.mxu0 %v966_v28 }
  0x7d   :  { %898 = vmatpush3.bf16.msra.mxu1 %v965_v27  ;;  %905 = vmatprep.subr.bf16.mxu0 %v967_v29 }
  0x7e   :  { %692 = vmatprep.subr.bf16.mxu1 %v976_v0 }
  0x80   :  { %906 = vmatpush3.bf16.msra.mxu0 %v967_v29 }
  0x81   :  { %907 = vmatprep.subr.bf16.mxu0 %v968_v30 }
  0x83   :  { %302 = vmatmul.mubr.bf16.gmra.mrb[4].mxu0 %v957_v22 }
  0x84   :  { %908 = vmatpush3.bf16.msra.mxu0 %v968_v30  ;;  %v994_v30 = vld [vmem:[#allocation10 + $0x64] ss:$8 sps:$4 sm:$0xff]  }
  0x85   :  { %909 = vmatprep.subr.bf16.mxu0 %v969_v31 }
  0x88   :  { %910 = vmatpush3.bf16.msra.mxu0 %v969_v31  ;;  %v992_v31 = vld [vmem:[#allocation10 + $0x60] ss:$8 sps:$4 sm:$0xff]  }
  0x89   :  { %911 = vmatprep.subr.bf16.mxu0 %v970_v32 }
  0x8c   :  { %912 = vmatpush3.bf16.msra.mxu0 %v970_v32  ;;  %v997_v32 = vld [vmem:[#allocation10 + $0x74] ss:$8 sps:$4 sm:$0xff]  }
  0x8d   :  { %913 = vmatprep.subr.bf16.mxu0 %v971_v60 }
  0x90   :  { %914 = vmatpush3.bf16.msra.mxu0 %v971_v60 }
  0x91   :  { %915 = vmatprep.subr.bf16.mxu0 %v972_v61 }
  0x94   :  { %916 = vmatpush3.bf16.msra.mxu0 %v972_v61 }
  0x95   :  { %917 = vmatprep.subr.bf16.mxu0 %v973_v62 }
  0x98   :  { %918 = vmatpush3.bf16.msra.mxu0 %v973_v62 }
 0x14e   :  { %v851_v33 = vpop.f32.mrb[0].mxu0 }
 0x14f   :  { %v852_v35 = vpop.f32.mrb[1].mxu0 }
 0x150   :  { %v853_v36 = vadd.f32 %v852_v35, %v851_v33  ;;  %v854_v37 = vpop.f32.mrb[2].mxu0  ;;  %v995_v33 = vld [vmem:[#allocation10 + $0x70] ss:$8 sps:$4 sm:$0xff]   ;;  %v810_v35 = vld [vmem:[%s1306_s6] ss:$0 sm:$0xff] }
 0x151   :  { %v855_v38 = vpop.f32.mrb[3].mxu0 }
 0x152   :  { %v296_v39 = vadd.f32 %v853_v36, %v780_v34  ;;  %v856_v40 = vadd.f32 %v855_v38, %v854_v37 }
 0x154   :  { %v299_v41 = vadd.f32 %v856_v40, %v780_v34  ;;  %v314_v42 = vmul.f32 0.2, %v296_v39  ;;  %vm310_vm0 = vcmp.gt.f32.partialorder %v296_v39, 0.0 }
 0x156   :  { %v857_v43 = vpop.f32.mrb[4].mxu0  ;;  %vm311_vm1 = vcmp.gt.f32.partialorder %v299_v41, 0.0  ;;  %v315_v44 = vmul.f32 0.2, %v299_v41  ;;  %v318_v48 = vsel %vm310_vm0, %v296_v39, %v314_v42 }
 0x157   :  { %v858_v45 = vpop.f32.mrb[5].mxu0 }
 0x158   :  { %v859_v46 = vadd.f32 %v858_v45, %v857_v43  ;;  %v860_v47 = vpop.f32.mrb[6].mxu0  ;;  %v319_v49 = vsel %vm311_vm1, %v299_v41, %v315_v44 }
 0x159   :  { %v861_v50 = vpop.f32.mrb[7].mxu0  ;;  %v322_v51 = vpack.c.bf16 %v319_v49, %v318_v48 }
 0x15a   :  { %v304_v52 = vadd.f32 %v859_v46, %v780_v34  ;;  %v862_v53 = vadd.f32 %v861_v50, %v860_v47  ;;  %v602_v50 = vlaneseq }
 0x15b   :  { %899 = vmatprep.mubr.bf16.mxu1 %v322_v51 }
 0x15c   :  { %v316_v54 = vmul.f32 0.2, %v304_v52  ;;  %v307_v55 = vadd.f32 %v862_v53, %v780_v34  ;;  %vm312_vm2 = vcmp.gt.f32.partialorder %v304_v52, 0.0  ;;  %v1147_v34 = vmov 0   ;;  %v600_v53 = vld [vmem:[%s1308_s8] sm:$0x3] }
 0x15d   :  { %v603_v51 = vshrl.u32 %v602_v50, 7  ;;  %s1148_s8 = smov [#allocation11]  }
 0x15e   :  { %vm313_vm3 = vcmp.gt.f32.partialorder %v307_v55, 0.0  ;;  %v317_v56 = vmul.f32 0.2, %v307_v55  ;;  %v320_v57 = vsel %vm312_vm2, %v304_v52, %v316_v54  ;;  %s766_s12 = sshll.u32 %s1148_s8, 4  ;;  %s767_s12 = int_to_ptr.vmem [resolvable:$true] %s766_s12 }
 0x15f   :  { %v604_v52 = vsub.s32 0, %v603_v51  ;;  %v608_v54 = vsub.s32 1, %v603_v51  ;;  %s1108_s13 = scalar_lea.vmem %s767_s12, 1024  ;;  %p1113_p13 = scmp.lt.s32.totalorder %s767_s12, %s767_s12 }
 0x160   :  { %v321_v58 = vsel %vm313_vm3, %v307_v55, %v317_v56  ;;  %p1109_p12 = scmp.ne.s32.totalorder %s767_s12, %s1108_s13  ;;  %p1114_p0 = scmp.lt.s32.totalorder %s1108_s13, %s1108_s13 }
 0x161   :  { %v323_v59 = vpack.c.bf16 %v321_v58, %v320_v57  ;;  %v605_v55 = vrot.slane %v600_v53, %v604_v52  ;;  %v609_v56 = vrot.slane %v600_v53, %v608_v54 }
 0x162   :  { %p1115_p1 = por %p1114_p0, %p1113_p13 }
 0x163   :  { %900 = vmatmul.mubr.bf16.vlgmr.msra.gmra.mrb[0].mxu1 %v323_v59 }
 0x164   :  { %693 = vmatpush1.bf16.msra.mxu1 %v974_v63  ;;  %724 = vmatprep.mubr.bf16.mxu1 %v1147_v34  ;;  %p1116_p2 = pnand %p1115_p1, %p1109_p12 }
 0x165   :  { %694 = vmatprep.subr.bf16.mxu1 %v979_v1 }
 0x168   :  { %695 = vmatpush1.bf16.msra.mxu1 %v977_v2 }
 0x169   :  { %696 = vmatprep.subr.bf16.mxu1 %v982_v3 }
 0x16c   :  { %697 = vmatpush1.bf16.msra.mxu1 %v980_v4 }
 0x16d   :  { %698 = vmatprep.subr.bf16.mxu1 %v985_v5 }
 0x170   :  { %699 = vmatpush1.bf16.msra.mxu1 %v983_v6 }
 0x171   :  { %700 = vmatprep.subr.bf16.mxu1 %v988_v7 }
 0x174   :  { %701 = vmatpush1.bf16.msra.mxu1 %v986_v8 }
 0x175   :  { %702 = vmatprep.subr.bf16.mxu1 %v991_v9 }
 0x178   :  { %703 = vmatpush1.bf16.msra.mxu1 %v989_v10 }
 0x179   :  { %704 = vmatprep.subr.bf16.mxu1 %v994_v30 }
 0x17c   :  { %705 = vmatpush1.bf16.msra.mxu1 %v992_v31 }
 0x17d   :  { %706 = vmatprep.subr.bf16.mxu1 %v997_v32 }
 0x180   :  { %707 = vmatpush1.bf16.msra.mxu1 %v995_v33 }
 0x236   :  { %v901_v12 = vpop.f32.mrb[0].mxu1 }
 0x237   :  { %v438_v13 = vadd.f32 %v901_v12, %v801_v11  ;;  %v429_v14 = vpop.f32.mrb[1].mxu1 }
 0x238   :  { %v430_v15 = vadd.f32 %v801_v11, %v429_v14  ;;  %v902_v16 = vpop.f32.mrb[2].mxu1 }
 0x239   :  { %v450_v17 = vmul.f32 0.2, %v438_v13  ;;  %v441_v18 = vadd.f32 %v902_v16, %v801_v11  ;;  %v432_v19 = vpop.f32.mrb[3].mxu1  ;;  %vm446_vm4 = vcmp.gt.f32.partialorder %v438_v13, 0.0 }
 0x23a   :  { %v448_v20 = vmul.f32 0.2, %v430_v15  ;;  %v433_v21 = vadd.f32 %v801_v11, %v432_v19  ;;  %vm444_vm5 = vcmp.gt.f32.partialorder %v430_v15, 0.0 }
 0x23b   :  { %vm447_vm6 = vcmp.gt.f32.partialorder %v441_v18, 0.0  ;;  %v451_v22 = vmul.f32 0.2, %v441_v18  ;;  %v454_v24 = vsel %vm446_vm4, %v438_v13, %v450_v17 }
 0x23c   :  { %vm445_vm7 = vcmp.gt.f32.partialorder %v433_v21, 0.0  ;;  %v449_v23 = vmul.f32 0.2, %v433_v21  ;;  %v452_v27 = vsel %vm444_vm5, %v430_v15, %v448_v20 }
 0x23d   :  { %v455_v25 = vsel %vm447_vm6, %v441_v18, %v451_v22 }
 0x23e   :  { %v457_v26 = vpack.c.bf16 %v455_v25, %v454_v24  ;;  %v453_v28 = vsel %vm445_vm7, %v433_v21, %v449_v23 }
 0x23f   :  { %v456_v29 = vpack.c.bf16 %v453_v28, %v452_v27 }
 0x241   :  { %919 = vmatprep.mubr.bf16.mxu0 %v456_v29 }
 0x242   :  { %920 = vmatmul.mubr.bf16.vlgmr.msra.gmra.mrb[8].mxu0 %v457_v26 }
 0x315   :  { %v921_v36 = vpop.f32.mrb[8].mxu0 }
 0x316   :  { %v572_v37 = vadd.f32 %v921_v36, %v810_v35  ;;  %v563_v38 = vpop.f32.mrb[9].mxu0 }
 0x317   :  { %v564_v39 = vadd.f32 %v810_v35, %v563_v38  ;;  %v922_v40 = vpop.f32.mrb[10].mxu0 }
 0x318   :  { %v575_v41 = vadd.f32 %v922_v40, %v810_v35  ;;  %v566_v42 = vpop.f32.mrb[11].mxu0  ;;  %v580_v44 = vmax.f32 %v572_v37, 0.0 }
 0x319   :  { %v567_v43 = vadd.f32 %v810_v35, %v566_v42  ;;  %v578_v46 = vmax.f32 %v564_v39, 0.0 }
 0x31a   :  { %v581_v45 = vmax.f32 %v575_v41, 0.0 }
 0x31b   :  { %v579_v47 = vmax.f32 %v567_v43, 0.0 }
 0x31c   :  { %v583_v48 = vpack.c.bf16 %v581_v45, %v580_v44 }
 0x31d   :  { %v582_v49 = vpack.c.bf16 %v579_v47, %v578_v46 }
 0x31f   :  { %725 = vmatmul.mubr.bf16.vlgmr.msra.gmra.mrb[4].mxu1 %v582_v49 }
 0x320   :  { %734 = vmatprep.mubr.bf16.mxu1 %v1147_v34 }
 0x327   :  { %735 = vmatmul.mubr.bf16.gmra.mrb[8].mxu1 %v583_v48 }
 0x3f2   :  { %v726_v57 = vpop.f32.mrb[4].mxu1 }
 0x3f3   :  { %v727_v58 = vadd.f32 %v726_v57, %v605_v55  ;;  %v728_v59 = vpop.f32.mrb[5].mxu1 }
 0x3f4   :  { %v729_v60 = vadd.f32 %v728_v59, %v609_v56  ;;  %v730_v61 = vpop.f32.mrb[6].mxu1 }
 0x3f5   :  { %v745_v62 = vmax.f32 %v727_v58, 0.0  ;;  %v731_v63 = vadd.f32 %v730_v61, %v605_v55  ;;  %v732_v0 = vpop.f32.mrb[7].mxu1 }
 0x3f6   :  { %v746_v1 = vmax.f32 %v729_v60, 0.0  ;;  %v733_v2 = vadd.f32 %v732_v0, %v609_v56 }
 0x3f7   :  { %753 = vst [vmem:[#allocation11] sm:$0xff] %v745_v62  ;;  %v747_v3 = vmax.f32 %v731_v63, 0.0 }
 0x3f8   :  { %754 = vst [vmem:[#allocation11 + $0x8] sm:$0xff] %v746_v1  ;;  %v748_v4 = vmax.f32 %v733_v2, 0.0 }
 0x3f9   :  { %755 = vst [vmem:[#allocation11 + $0x10] sm:$0xff] %v747_v3 }
 0x3fa   :  { %756 = vst [vmem:[#allocation11 + $0x18] sm:$0xff] %v748_v4  ;;  %v736_v5 = vpop.f32.mrb[8].mxu1 }
 0x3fb   :  { %v737_v6 = vadd.f32 %v736_v5, %v605_v55  ;;  %v738_v7 = vpop.f32.mrb[9].mxu1 }
 0x3fc   :  { %v739_v8 = vadd.f32 %v738_v7, %v609_v56  ;;  %v740_v9 = vpop.f32.mrb[10].mxu1 }
 0x3fd   :  { %v749_v10 = vmax.f32 %v737_v6, 0.0  ;;  %v741_v11 = vadd.f32 %v740_v9, %v605_v55  ;;  %v742_v12 = vpop.f32.mrb[11].mxu1 }
 0x3fe   :  { %v750_v13 = vmax.f32 %v739_v8, 0.0  ;;  %v743_v14 = vadd.f32 %v742_v12, %v609_v56 }
 0x3ff   :  { %757 = vst [vmem:[#allocation11 + $0x20] sm:$0xff] %v749_v10  ;;  %v751_v15 = vmax.f32 %v741_v11, 0.0 }
 0x400   :  { %758 = vst [vmem:[#allocation11 + $0x28] sm:$0xff] %v750_v13  ;;  %v752_v16 = vmax.f32 %v743_v14, 0.0 }
 0x401   :  { %759 = vst [vmem:[#allocation11 + $0x30] sm:$0xff] %v751_v15 }
 0x402   :  { %760 = vst [vmem:[#allocation11 + $0x38] sm:$0xff] %v752_v16 }
 0x403   :  { %1119 = shalt.err (!%p1116_p2)
}
 0x404   :  { %s1120_s14 = scalar_lea.hbm %s1309_s9, 1024 }
 0x405   :  { %p1121_p3 = scmp.ne.s32.totalorder %s1309_s9, %s1120_s14  ;;  %p1124_p4 = scmp.lt.u32.totalorder %s1120_s14, %s1309_s9 }
 0x407   :  { %p1126_p5 = pnand %p1124_p4, %p1121_p3 }
 0x409   :  { %1129 = shalt.err (!%p1126_p5)
}
 0x40a   :  { %s1149_s26 = smov 256   ;;  %s1150_s18 = smov 16  }
 0x40b   :  { %772 = dma.vmem_to_hbm [thread:$0]  %s767_s12, 1024, %s1309_s9, [#allocation4], %s1149_s26, %s1149_s26, %s1150_s18  }
 0x40c   :  { %1136 = dma.done.wait [#allocation4], 1024  }
 0x40d   :  { %1137 = vsyncadd [#allocation4], 4294966272 }
 0x40e   :  { %776 = vsyncpa [#allocation3], 1 }
 0x40f   :  { %777 = vsyncpa [#allocation6], 1 }
 0x410   :  { %778 = vsyncpa [#allocation9], 1 }
 0x411   :  { %779 = vsyncpa [#allocation4], 1 }

</bundles_post_ra>
